<compile_context>
chip_gen: v6e
topology: v6e:2x2x1
jax: 0.10.0
libtpu: 0.0.40
codegen_flags: <defaults>
</compile_context>

<pallas_src>
import functools
import math

import jax
import jax.numpy as jnp
from jax import lax
from jax.experimental import pallas as pl
from jax.experimental.pallas import tpu as pltpu


def _pad8(n):
    return ((n + 7) // 8) * 8


# ---------------------------------------------------------------------------
# Fused DIRNN kernel: both FCRNN branches (block-diagonal) + BPNN head
# ---------------------------------------------------------------------------
def dirnn_kernel(x_ref, w_ref, b_ref, out_ref, *, T, Bp, B, horizon):
    """x_ref: (T*Bp, Dc) time-major padded inputs of BOTH branches.
    w_ref: packed weight slab (rows, Wg); b_ref: (8, Wg) bias slab.
    State layout: g = (Bp, Wg) with lanes [0:Hc) = h1 (both branches, block-diag)
    and lanes [Hc:Wg) = h2."""
    _, Dc = x_ref.shape
    Wg = w_ref.shape[1]
    Hc = Wg // 2

    # Static, 8-aligned slices of the packed weight slab ((in, out) layout).
    r = 0
    w_ih1 = w_ref[r:r + Dc, :]; r += Dc     # x -> h1 half (right half all-zero)
    w_l1 = w_ref[r:r + Wg, :]; r += Wg      # [whh1 blockdiag | identity on h2 half]
    w_l2 = w_ref[r:r + Wg, :]; r += Wg      # [identity on h1 half | wih2/whh2 blockdiag]
    w_fc1 = w_ref[r:r + Wg, :]; r += Wg     # h2 half -> hid (lanes [0:Hc))
    w_fc2 = w_ref[r:r + Wg, :]; r += Wg     # hid -> interleaved [s0,p0,s1,p1,...]
    w_bp1 = w_ref[r:r + Wg, :]; r += Wg     # BP fc1 as block matmul
    w_bp2 = w_ref[r:r + Wg, :]              # BP fc2 as block matmul

    b1 = b_ref[0:1, :]       # fused (b_ih1 + b_hh1), zero on the h2 half
    b2 = b_ref[1:2, :]       # fused (b_ih2 + b_hh2), zero on the h1 half
    bfc1 = b_ref[2:3, :]
    bfc2 = b_ref[3:4, :]
    bbp1 = b_ref[4:5, :]
    bbp2 = b_ref[5:6, :]

    # ONE hoisted layer-1 input projection for both branches and ALL timesteps.
    x1 = jnp.dot(x_ref[...], w_ih1, preferred_element_type=jnp.float32)  # (T*Bp, Wg)

    # Lane mask: True on the h1 half, False on the h2 half (hoisted out of the loop).
    is_h1 = lax.broadcasted_iota(jnp.int32, (Bp, Wg), 1) < Hc

    g = jnp.zeros((Bp, Wg), jnp.float32)
    # Fully unrolled recurrence (T is small & static): 2 dots + 2 tanh per step
    # for BOTH branches; the non-updated half rides through the MXU identity block.
    for t in range(T):
        pre1 = (x1[t * Bp:(t + 1) * Bp, :] + b1 +
                jnp.dot(g, w_l1, preferred_element_type=jnp.float32))
        g = jnp.where(is_h1, jnp.tanh(pre1), pre1)      # update h1, pass h2 through
        pre2 = jnp.dot(g, w_l2, preferred_element_type=jnp.float32) + b2
        g = jnp.where(is_h1, pre2, jnp.tanh(pre2))      # pass h1 through, update h2

    # FC head (both branches at once), then the BPNN head as two tiny matmuls.
    hid = jnp.maximum(jnp.dot(g, w_fc1, preferred_element_type=jnp.float32) + bfc1, 0.0)
    fco = jnp.dot(hid, w_fc2, preferred_element_type=jnp.float32) + bfc2
    hbp = jnp.maximum(jnp.dot(fco, w_bp1, preferred_element_type=jnp.float32) + bbp1, 0.0)
    y = jnp.maximum(jnp.dot(hbp, w_bp2, preferred_element_type=jnp.float32) + bbp2, 0.0)
    out_ref[...] = y[0:B, 0:horizon]


# ---------------------------------------------------------------------------
# Wrapper: one pallas_call for the whole model
# ---------------------------------------------------------------------------
def _full_spec(shape):
    # Whole array as one block (last two dims equal the full array dims).
    return pl.BlockSpec(shape, lambda i: (0,) * len(shape))


@functools.partial(jax.jit, static_argnames=("horizon",))
def dirnn_forward(x_seq, x_per, packed, horizon=1):
    """x_seq: (B, T, Ds), x_per: (B, T, Dp) batch-first -> (B, horizon)."""
    x_seq = x_seq.astype(jnp.float32)
    x_per = x_per.astype(jnp.float32)
    B, T, Ds = x_seq.shape
    _, _, Dp = x_per.shape
    Bp = _pad8(B)                          # pad batch to a full sublane group
    Dcs, Dcp = _pad8(Ds), _pad8(Dp)
    Dc = Dcs + Dcp

    # Tiny wrapper glue (a few hundred bytes): time-major + batch-padded +
    # lane-concatenated inputs so the kernel's layer-1 projection is ONE aligned dot
    # and every per-step slice starts on an 8-aligned row.
    x_cat = jnp.zeros((T, Bp, Dc), jnp.float32)
    x_cat = x_cat.at[:, :B, 0:Ds].set(jnp.transpose(x_seq, (1, 0, 2)))
    x_cat = x_cat.at[:, :B, Dcs:Dcs + Dp].set(jnp.transpose(x_per, (1, 0, 2)))
    x_cat = x_cat.reshape(T * Bp, Dc)

    w = packed["w"]
    b = packed["b"]
    kernel = functools.partial(dirnn_kernel, T=T, Bp=Bp, B=B, horizon=horizon)
    return pl.pallas_call(
        kernel,
        grid=(1,),
        in_specs=[_full_spec(x_cat.shape), _full_spec(w.shape), _full_spec(b.shape)],
        out_specs=_full_spec((B, horizon)),
        out_shape=jax.ShapeDtypeStruct((B, horizon), jnp.float32),
        compiler_params=pltpu.CompilerParams(dimension_semantics=("arbitrary",)),
    )(x_cat, w, b)


# ---------------------------------------------------------------------------
# One-time parameter packing (init-time, outside the forward path)
# ---------------------------------------------------------------------------
def pack_dirnn_params(params):
    """Pack both FCRNN branches (block-diagonal) + BPNN head into one weight slab
    (rows, Wg) and one (8, Wg) bias slab.  Wg = 4 * pad8(hidden): lanes [0:Hc)
    carry h1 of both branches, lanes [Hc:Wg) carry h2."""
    s, p, bp = params["s_rnn"], params["p_rnn"], params["bpnn"]
    H = s["whh1"].shape[0]
    Ds = s["wih1"].shape[1]
    Dp = p["wih1"].shape[1]
    horizon = s["wfc2"].shape[0]
    Hb = bp["w1"].shape[0]
    Hp = _pad8(H)
    Hc = 2 * Hp
    Wg = 2 * Hc
    Dcs, Dcp = _pad8(Ds), _pad8(Dp)
    Dc = Dcs + Dcp
    assert horizon <= Hp, "packing assumes horizon <= padded hidden size"
    assert horizon * Hb <= Wg, "BP hidden columns must fit the packed lane width"
    f32 = jnp.float32

    # layer-1 input projection (both branches) -> h1 half; right half stays zero.
    w_ih1 = jnp.zeros((Dc, Wg), f32)
    w_ih1 = w_ih1.at[0:Ds, 0:H].set(s["wih1"].T)
    w_ih1 = w_ih1.at[Dcs:Dcs + Dp, Hp:Hp + H].set(p["wih1"].T)

    # layer-1 recurrence (block-diag) + identity pass-through of the h2 half.
    w_l1 = jnp.zeros((Wg, Wg), f32)
    w_l1 = w_l1.at[0:H, 0:H].set(s["whh1"].T)
    w_l1 = w_l1.at[Hp:Hp + H, Hp:Hp + H].set(p["whh1"].T)
    w_l1 = w_l1.at[Hc:Wg, Hc:Wg].set(jnp.eye(Hc, dtype=f32))

    # layer-2 fused (ih2 from new h1, hh2 from old h2) + identity pass-through of h1.
    w_l2 = jnp.zeros((Wg, Wg), f32)
    w_l2 = w_l2.at[0:Hc, 0:Hc].set(jnp.eye(Hc, dtype=f32))
    w_l2 = w_l2.at[0:H, Hc:Hc + H].set(s["wih2"].T)
    w_l2 = w_l2.at[Hp:Hp + H, Hc + Hp:Hc + Hp + H].set(p["wih2"].T)
    w_l2 = w_l2.at[Hc:Hc + H, Hc:Hc + H].set(s["whh2"].T)
    w_l2 = w_l2.at[Hc + Hp:Hc + Hp + H, Hc + Hp:Hc + Hp + H].set(p["whh2"].T)

    # fc1: reads the h2 half, writes hid into lanes [0:Hc).
    w_fc1 = jnp.zeros((Wg, Wg), f32)
    w_fc1 = w_fc1.at[Hc:Hc + H, 0:H].set(s["wfc1"].T)
    w_fc1 = w_fc1.at[Hc + Hp:Hc + Hp + H, Hp:Hp + H].set(p["wfc1"].T)

    # fc2: interleave the two branches' outputs: lane 2j = s_j, lane 2j+1 = p_j.
    w_fc2 = jnp.zeros((Wg, Wg), f32)
    for j in range(horizon):
        w_fc2 = w_fc2.at[0:H, 2 * j].set(s["wfc2"][j, :])
        w_fc2 = w_fc2.at[Hp:Hp + H, 2 * j + 1].set(p["wfc2"][j, :])

    # BPNN fc1 as a block matmul: col j*Hb+k <- s_j*W1[k,0] + p_j*W1[k,1].
    w_bp1 = jnp.zeros((Wg, Wg), f32)
    for j in range(horizon):
        w_bp1 = w_bp1.at[2 * j, j * Hb:(j + 1) * Hb].set(bp["w1"][:, 0])
        w_bp1 = w_bp1.at[2 * j + 1, j * Hb:(j + 1) * Hb].set(bp["w1"][:, 1])

    # BPNN fc2 as a block matmul: rows j*Hb+k -> col j with W2[0,k].
    w_bp2 = jnp.zeros((Wg, Wg), f32)
    for j in range(horizon):
        w_bp2 = w_bp2.at[j * Hb:(j + 1) * Hb, j].set(bp["w2"][0, :])

    w_pack = jnp.concatenate([w_ih1, w_l1, w_l2, w_fc1, w_fc2, w_bp1, w_bp2], axis=0)

    b_pack = jnp.zeros((8, Wg), f32)
    b_pack = b_pack.at[0, 0:H].set(s["bih1"][0] + s["bhh1"][0])
    b_pack = b_pack.at[0, Hp:Hp + H].set(p["bih1"][0] + p["bhh1"][0])
    b_pack = b_pack.at[1, Hc:Hc + H].set(s["bih2"][0] + s["bhh2"][0])
    b_pack = b_pack.at[1, Hc + Hp:Hc + Hp + H].set(p["bih2"][0] + p["bhh2"][0])
    b_pack = b_pack.at[2, 0:H].set(s["bfc1"][0])
    b_pack = b_pack.at[2, Hp:Hp + H].set(p["bfc1"][0])
    for j in range(horizon):
        b_pack = b_pack.at[3, 2 * j].set(s["bfc2"][0, j])
        b_pack = b_pack.at[3, 2 * j + 1].set(p["bfc2"][0, j])
        b_pack = b_pack.at[4, j * Hb:(j + 1) * Hb].set(bp["b1"][0])
        b_pack = b_pack.at[5, j].set(bp["b2"][0, 0])

    return {"w": w_pack, "b": b_pack}


# ---------------------------------------------------------------------------
# Deterministic parameter initialisation (PyTorch default U(-k, k))
# ---------------------------------------------------------------------------
def _uniform(key, shape, k):
    return jax.random.uniform(key, shape, jnp.float32, -k, k)


def init_fcrnn_params(key, input_size, hidden_size, output_size):
    ks = jax.random.split(key, 12)
    kr = 1.0 / math.sqrt(hidden_size)
    return {
        "wih1": _uniform(ks[0], (hidden_size, input_size), kr),
        "whh1": _uniform(ks[1], (hidden_size, hidden_size), kr),
        "bih1": _uniform(ks[2], (1, hidden_size), kr),
        "bhh1": _uniform(ks[3], (1, hidden_size), kr),
        "wih2": _uniform(ks[4], (hidden_size, hidden_size), kr),
        "whh2": _uniform(ks[5], (hidden_size, hidden_size), kr),
        "bih2": _uniform(ks[6], (1, hidden_size), kr),
        "bhh2": _uniform(ks[7], (1, hidden_size), kr),
        "wfc1": _uniform(ks[8], (hidden_size, hidden_size), kr),
        "bfc1": _uniform(ks[9], (1, hidden_size), kr),
        "wfc2": _uniform(ks[10], (output_size, hidden_size), kr),
        "bfc2": _uniform(ks[11], (1, output_size), kr),
    }


def init_bpnn_params(key, input_size=2, hidden_size=5, output_size=1):
    ks = jax.random.split(key, 4)
    k1 = 1.0 / math.sqrt(input_size)
    k2 = 1.0 / math.sqrt(hidden_size)
    return {
        "w1": _uniform(ks[0], (hidden_size, input_size), k1),
        "b1": _uniform(ks[1], (1, hidden_size), k1),
        "w2": _uniform(ks[2], (output_size, hidden_size), k2),
        "b2": _uniform(ks[3], (1, output_size), k2),
    }


def init_dirnn_params(key, seq_input_size, per_input_size,
                      hidden_size=12, bp_hidden_size=5, horizon=1):
    k1, k2, k3 = jax.random.split(key, 3)
    return {
        "s_rnn": init_fcrnn_params(k1, seq_input_size, hidden_size, horizon),
        "p_rnn": init_fcrnn_params(k2, per_input_size, hidden_size, horizon),
        "bpnn": init_bpnn_params(k3, 2, bp_hidden_size, 1),
    }


# ---------------------------------------------------------------------------
# Pure-JAX reference (matches the PyTorch forward) for a correctness check
# ---------------------------------------------------------------------------
def _fcrnn_ref(x, p):
    B, T, _ = x.shape
    H = p["whh1"].shape[0]
    h1 = jnp.zeros((B, H), jnp.float32)
    h2 = jnp.zeros((B, H), jnp.float32)
    for t in range(T):
        xt = x[:, t, :]
        h1 = jnp.tanh(xt @ p["wih1"].T + p["bih1"] + h1 @ p["whh1"].T + p["bhh1"])
        h2 = jnp.tanh(h1 @ p["wih2"].T + p["bih2"] + h2 @ p["whh2"].T + p["bhh2"])
    hid = jnp.maximum(h2 @ p["wfc1"].T + p["bfc1"], 0.0)
    return hid @ p["wfc2"].T + p["bfc2"]


def _dirnn_ref(x_seq, x_per, params, horizon):
    s = _fcrnn_ref(x_seq, params["s_rnn"])
    p = _fcrnn_ref(x_per, params["p_rnn"])
    comb = jnp.stack([s, p], axis=2).reshape(-1, 2)
    bp = params["bpnn"]
    h = jnp.maximum(comb @ bp["w1"].T + bp["b1"], 0.0)
    y = jnp.maximum(h @ bp["w2"].T + bp["b2"], 0.0)
    return y[:, 0].reshape(-1, horizon)


# ---------------------------------------------------------------------------
if __name__ == "__main__":
    B, T = 2, 8
    seq_input_size, per_input_size = 4, 3
    hidden_size, bp_hidden_size, horizon = 12, 5, 1

    key = jax.random.PRNGKey(0)
    k_params, k_seq, k_per = jax.random.split(key, 3)

    params = init_dirnn_params(k_params, seq_input_size, per_input_size,
                               hidden_size, bp_hidden_size, horizon)
    packed = pack_dirnn_params(params)            # one-time, outside forward

    x_seq = jax.random.normal(k_seq, (B, T, seq_input_size), jnp.float32)
    x_per = jax.random.normal(k_per, (B, T, per_input_size), jnp.float32)

    out = dirnn_forward(x_seq, x_per, packed, horizon=horizon)
    out = jax.block_until_ready(out)
    assert out.shape == (B, horizon), out.shape

    ref = _dirnn_ref(x_seq, x_per, params, horizon)
    assert jnp.allclose(out, ref, atol=1e-3, rtol=1e-3), (out, ref)
    print("KERNEL_OK")
</pallas_src>

<mosaic_0001>
module attributes {stable_mosaic.version = 11 : i64} {
  func.func @dirnn_kernel(%arg0: i32, %arg1: memref<64x16xf32, #tpu.memory_space<vmem>>, %arg2: memref<400x64xf32, #tpu.memory_space<vmem>>, %arg3: memref<8x64xf32, #tpu.memory_space<vmem>>, %arg4: memref<2x1xf32, #tpu.memory_space<vmem>>) attributes {dimension_semantics = [#tpu.dimension_semantics<arbitrary>], iteration_bounds = array<i64: 1>, scalar_prefetch = 0 : i64, scratch_operands = 0 : i64, tpu.core_type = #tpu.core_type<tc>, window_params = [{pipeline_mode = #tpu.pipeline_mode<synchronous>, transform_indices = @transform_0, window_bounds = array<i64: 64, 16>}, {pipeline_mode = #tpu.pipeline_mode<synchronous>, transform_indices = @transform_1, window_bounds = array<i64: 400, 64>}, {pipeline_mode = #tpu.pipeline_mode<synchronous>, transform_indices = @transform_2, window_bounds = array<i64: 8, 64>}, {pipeline_mode = #tpu.pipeline_mode<synchronous>, transform_indices = @transform_3, window_bounds = array<i64: 2, 1>}]} {
    %c0 = arith.constant 0 : index
    %c0_0 = arith.constant 0 : index
    %0 = vector.load %arg2[%c0, %c0_0] : memref<400x64xf32, #tpu.memory_space<vmem>>, vector<16x64xf32>
    %c16 = arith.constant 16 : index
    %c0_1 = arith.constant 0 : index
    %1 = vector.load %arg2[%c16, %c0_1] : memref<400x64xf32, #tpu.memory_space<vmem>>, vector<64x64xf32>
    %c80 = arith.constant 80 : index
    %c0_2 = arith.constant 0 : index
    %2 = vector.load %arg2[%c80, %c0_2] : memref<400x64xf32, #tpu.memory_space<vmem>>, vector<64x64xf32>
    %c144 = arith.constant 144 : index
    %c0_3 = arith.constant 0 : index
    %3 = vector.load %arg2[%c144, %c0_3] : memref<400x64xf32, #tpu.memory_space<vmem>>, vector<64x64xf32>
    %c208 = arith.constant 208 : index
    %c0_4 = arith.constant 0 : index
    %4 = vector.load %arg2[%c208, %c0_4] : memref<400x64xf32, #tpu.memory_space<vmem>>, vector<64x64xf32>
    %c272 = arith.constant 272 : index
    %c0_5 = arith.constant 0 : index
    %5 = vector.load %arg2[%c272, %c0_5] : memref<400x64xf32, #tpu.memory_space<vmem>>, vector<64x64xf32>
    %c336 = arith.constant 336 : index
    %c0_6 = arith.constant 0 : index
    %6 = vector.load %arg2[%c336, %c0_6] : memref<400x64xf32, #tpu.memory_space<vmem>>, vector<64x64xf32>
    %c0_7 = arith.constant 0 : index
    %c0_8 = arith.constant 0 : index
    %7 = vector.load %arg3[%c0_7, %c0_8] : memref<8x64xf32, #tpu.memory_space<vmem>>, vector<1x64xf32>
    %c1 = arith.constant 1 : index
    %c0_9 = arith.constant 0 : index
    %8 = vector.load %arg3[%c1, %c0_9] : memref<8x64xf32, #tpu.memory_space<vmem>>, vector<1x64xf32>
    %c2 = arith.constant 2 : index
    %c0_10 = arith.constant 0 : index
    %9 = vector.load %arg3[%c2, %c0_10] : memref<8x64xf32, #tpu.memory_space<vmem>>, vector<1x64xf32>
    %c3 = arith.constant 3 : index
    %c0_11 = arith.constant 0 : index
    %10 = vector.load %arg3[%c3, %c0_11] : memref<8x64xf32, #tpu.memory_space<vmem>>, vector<1x64xf32>
    %c4 = arith.constant 4 : index
    %c0_12 = arith.constant 0 : index
    %11 = vector.load %arg3[%c4, %c0_12] : memref<8x64xf32, #tpu.memory_space<vmem>>, vector<1x64xf32>
    %c5 = arith.constant 5 : index
    %c0_13 = arith.constant 0 : index
    %12 = vector.load %arg3[%c5, %c0_13] : memref<8x64xf32, #tpu.memory_space<vmem>>, vector<1x64xf32>
    %c0_14 = arith.constant 0 : index
    %c0_15 = arith.constant 0 : index
    %13 = vector.load %arg1[%c0_14, %c0_15] : memref<64x16xf32, #tpu.memory_space<vmem>>, vector<64x16xf32>
    %cst = arith.constant dense<0.000000e+00> : vector<64x64xf32>
    %14 = tpu.matmul %13, %0, %cst {dimension_numbers = #tpu.dot_dimension_numbers<[1], [0], [0], [1], [0, 0, 1, 1], [], []>} : vector<64x16xf32>, vector<16x64xf32>, vector<64x64xf32> -> vector<64x64xf32>
    %15 = tpu.iota {dimensions = array<i32: 1>} : vector<8x64xi32>
    %c32_i32 = arith.constant 32 : i32
    %16 = vector.broadcast %c32_i32 : i32 to vector<8x64xi32>
    %17 = arith.cmpi slt, %15, %16 : vector<8x64xi32>
    %cst_16 = arith.constant 0.000000e+00 : f32
    %18 = vector.broadcast %cst_16 : f32 to vector<8x64xf32>
    %19 = vector.extract_strided_slice %14 {offsets = [0, 0], sizes = [8, 64], strides = [1, 1]} : vector<64x64xf32> to vector<8x64xf32>
    %20 = vector.broadcast %7 : vector<1x64xf32> to vector<8x64xf32>
    %21 = arith.addf %19, %20 : vector<8x64xf32>
    %cst_17 = arith.constant dense<0.000000e+00> : vector<8x64xf32>
    %22 = tpu.matmul %18, %1, %cst_17 {dimension_numbers = #tpu.dot_dimension_numbers<[1], [0], [0], [1], [0, 0, 1, 1], [], []>} : vector<8x64xf32>, vector<64x64xf32>, vector<8x64xf32> -> vector<8x64xf32>
    %23 = arith.addf %21, %22 : vector<8x64xf32>
    %24 = math.tanh %23 : vector<8x64xf32>
    %25 = arith.select %17, %24, %23 : vector<8x64xi1>, vector<8x64xf32>
    %cst_18 = arith.constant dense<0.000000e+00> : vector<8x64xf32>
    %26 = tpu.matmul %25, %2, %cst_18 {dimension_numbers = #tpu.dot_dimension_numbers<[1], [0], [0], [1], [0, 0, 1, 1], [], []>} : vector<8x64xf32>, vector<64x64xf32>, vector<8x64xf32> -> vector<8x64xf32>
    %27 = vector.broadcast %8 : vector<1x64xf32> to vector<8x64xf32>
    %28 = arith.addf %26, %27 : vector<8x64xf32>
    %29 = math.tanh %28 : vector<8x64xf32>
    %30 = arith.select %17, %28, %29 : vector<8x64xi1>, vector<8x64xf32>
    %31 = vector.extract_strided_slice %14 {offsets = [8, 0], sizes = [8, 64], strides = [1, 1]} : vector<64x64xf32> to vector<8x64xf32>
    %32 = vector.broadcast %7 : vector<1x64xf32> to vector<8x64xf32>
    %33 = arith.addf %31, %32 : vector<8x64xf32>
    %cst_19 = arith.constant dense<0.000000e+00> : vector<8x64xf32>
    %34 = tpu.matmul %30, %1, %cst_19 {dimension_numbers = #tpu.dot_dimension_numbers<[1], [0], [0], [1], [0, 0, 1, 1], [], []>} : vector<8x64xf32>, vector<64x64xf32>, vector<8x64xf32> -> vector<8x64xf32>
    %35 = arith.addf %33, %34 : vector<8x64xf32>
    %36 = math.tanh %35 : vector<8x64xf32>
    %37 = arith.select %17, %36, %35 : vector<8x64xi1>, vector<8x64xf32>
    %cst_20 = arith.constant dense<0.000000e+00> : vector<8x64xf32>
    %38 = tpu.matmul %37, %2, %cst_20 {dimension_numbers = #tpu.dot_dimension_numbers<[1], [0], [0], [1], [0, 0, 1, 1], [], []>} : vector<8x64xf32>, vector<64x64xf32>, vector<8x64xf32> -> vector<8x64xf32>
    %39 = vector.broadcast %8 : vector<1x64xf32> to vector<8x64xf32>
    %40 = arith.addf %38, %39 : vector<8x64xf32>
    %41 = math.tanh %40 : vector<8x64xf32>
    %42 = arith.select %17, %40, %41 : vector<8x64xi1>, vector<8x64xf32>
    %43 = vector.extract_strided_slice %14 {offsets = [16, 0], sizes = [8, 64], strides = [1, 1]} : vector<64x64xf32> to vector<8x64xf32>
    %44 = vector.broadcast %7 : vector<1x64xf32> to vector<8x64xf32>
    %45 = arith.addf %43, %44 : vector<8x64xf32>
    %cst_21 = arith.constant dense<0.000000e+00> : vector<8x64xf32>
    %46 = tpu.matmul %42, %1, %cst_21 {dimension_numbers = #tpu.dot_dimension_numbers<[1], [0], [0], [1], [0, 0, 1, 1], [], []>} : vector<8x64xf32>, vector<64x64xf32>, vector<8x64xf32> -> vector<8x64xf32>
    %47 = arith.addf %45, %46 : vector<8x64xf32>
    %48 = math.tanh %47 : vector<8x64xf32>
    %49 = arith.select %17, %48, %47 : vector<8x64xi1>, vector<8x64xf32>
    %cst_22 = arith.constant dense<0.000000e+00> : vector<8x64xf32>
    %50 = tpu.matmul %49, %2, %cst_22 {dimension_numbers = #tpu.dot_dimension_numbers<[1], [0], [0], [1], [0, 0, 1, 1], [], []>} : vector<8x64xf32>, vector<64x64xf32>, vector<8x64xf32> -> vector<8x64xf32>
    %51 = vector.broadcast %8 : vector<1x64xf32> to vector<8x64xf32>
    %52 = arith.addf %50, %51 : vector<8x64xf32>
    %53 = math.tanh %52 : vector<8x64xf32>
    %54 = arith.select %17, %52, %53 : vector<8x64xi1>, vector<8x64xf32>
    %55 = vector.extract_strided_slice %14 {offsets = [24, 0], sizes = [8, 64], strides = [1, 1]} : vector<64x64xf32> to vector<8x64xf32>
    %56 = vector.broadcast %7 : vector<1x64xf32> to vector<8x64xf32>
    %57 = arith.addf %55, %56 : vector<8x64xf32>
    %cst_23 = arith.constant dense<0.000000e+00> : vector<8x64xf32>
    %58 = tpu.matmul %54, %1, %cst_23 {dimension_numbers = #tpu.dot_dimension_numbers<[1], [0], [0], [1], [0, 0, 1, 1], [], []>} : vector<8x64xf32>, vector<64x64xf32>, vector<8x64xf32> -> vector<8x64xf32>
    %59 = arith.addf %57, %58 : vector<8x64xf32>
    %60 = math.tanh %59 : vector<8x64xf32>
    %61 = arith.select %17, %60, %59 : vector<8x64xi1>, vector<8x64xf32>
    %cst_24 = arith.constant dense<0.000000e+00> : vector<8x64xf32>
    %62 = tpu.matmul %61, %2, %cst_24 {dimension_numbers = #tpu.dot_dimension_numbers<[1], [0], [0], [1], [0, 0, 1, 1], [], []>} : vector<8x64xf32>, vector<64x64xf32>, vector<8x64xf32> -> vector<8x64xf32>
    %63 = vector.broadcast %8 : vector<1x64xf32> to vector<8x64xf32>
    %64 = arith.addf %62, %63 : vector<8x64xf32>
    %65 = math.tanh %64 : vector<8x64xf32>
    %66 = arith.select %17, %64, %65 : vector<8x64xi1>, vector<8x64xf32>
    %67 = vector.extract_strided_slice %14 {offsets = [32, 0], sizes = [8, 64], strides = [1, 1]} : vector<64x64xf32> to vector<8x64xf32>
    %68 = vector.broadcast %7 : vector<1x64xf32> to vector<8x64xf32>
    %69 = arith.addf %67, %68 : vector<8x64xf32>
    %cst_25 = arith.constant dense<0.000000e+00> : vector<8x64xf32>
    %70 = tpu.matmul %66, %1, %cst_25 {dimension_numbers = #tpu.dot_dimension_numbers<[1], [0], [0], [1], [0, 0, 1, 1], [], []>} : vector<8x64xf32>, vector<64x64xf32>, vector<8x64xf32> -> vector<8x64xf32>
    %71 = arith.addf %69, %70 : vector<8x64xf32>
    %72 = math.tanh %71 : vector<8x64xf32>
    %73 = arith.select %17, %72, %71 : vector<8x64xi1>, vector<8x64xf32>
    %cst_26 = arith.constant dense<0.000000e+00> : vector<8x64xf32>
    %74 = tpu.matmul %73, %2, %cst_26 {dimension_numbers = #tpu.dot_dimension_numbers<[1], [0], [0], [1], [0, 0, 1, 1], [], []>} : vector<8x64xf32>, vector<64x64xf32>, vector<8x64xf32> -> vector<8x64xf32>
    %75 = vector.broadcast %8 : vector<1x64xf32> to vector<8x64xf32>
    %76 = arith.addf %74, %75 : vector<8x64xf32>
    %77 = math.tanh %76 : vector<8x64xf32>
    %78 = arith.select %17, %76, %77 : vector<8x64xi1>, vector<8x64xf32>
    %79 = vector.extract_strided_slice %14 {offsets = [40, 0], sizes = [8, 64], strides = [1, 1]} : vector<64x64xf32> to vector<8x64xf32>
    %80 = vector.broadcast %7 : vector<1x64xf32> to vector<8x64xf32>
    %81 = arith.addf %79, %80 : vector<8x64xf32>
    %cst_27 = arith.constant dense<0.000000e+00> : vector<8x64xf32>
    %82 = tpu.matmul %78, %1, %cst_27 {dimension_numbers = #tpu.dot_dimension_numbers<[1], [0], [0], [1], [0, 0, 1, 1], [], []>} : vector<8x64xf32>, vector<64x64xf32>, vector<8x64xf32> -> vector<8x64xf32>
    %83 = arith.addf %81, %82 : vector<8x64xf32>
    %84 = math.tanh %83 : vector<8x64xf32>
    %85 = arith.select %17, %84, %83 : vector<8x64xi1>, vector<8x64xf32>
    %cst_28 = arith.constant dense<0.000000e+00> : vector<8x64xf32>
    %86 = tpu.matmul %85, %2, %cst_28 {dimension_numbers = #tpu.dot_dimension_numbers<[1], [0], [0], [1], [0, 0, 1, 1], [], []>} : vector<8x64xf32>, vector<64x64xf32>, vector<8x64xf32> -> vector<8x64xf32>
    %87 = vector.broadcast %8 : vector<1x64xf32> to vector<8x64xf32>
    %88 = arith.addf %86, %87 : vector<8x64xf32>
    %89 = math.tanh %88 : vector<8x64xf32>
    %90 = arith.select %17, %88, %89 : vector<8x64xi1>, vector<8x64xf32>
    %91 = vector.extract_strided_slice %14 {offsets = [48, 0], sizes = [8, 64], strides = [1, 1]} : vector<64x64xf32> to vector<8x64xf32>
    %92 = vector.broadcast %7 : vector<1x64xf32> to vector<8x64xf32>
    %93 = arith.addf %91, %92 : vector<8x64xf32>
    %cst_29 = arith.constant dense<0.000000e+00> : vector<8x64xf32>
    %94 = tpu.matmul %90, %1, %cst_29 {dimension_numbers = #tpu.dot_dimension_numbers<[1], [0], [0], [1], [0, 0, 1, 1], [], []>} : vector<8x64xf32>, vector<64x64xf32>, vector<8x64xf32> -> vector<8x64xf32>
    %95 = arith.addf %93, %94 : vector<8x64xf32>
    %96 = math.tanh %95 : vector<8x64xf32>
    %97 = arith.select %17, %96, %95 : vector<8x64xi1>, vector<8x64xf32>
    %cst_30 = arith.constant dense<0.000000e+00> : vector<8x64xf32>
    %98 = tpu.matmul %97, %2, %cst_30 {dimension_numbers = #tpu.dot_dimension_numbers<[1], [0], [0], [1], [0, 0, 1, 1], [], []>} : vector<8x64xf32>, vector<64x64xf32>, vector<8x64xf32> -> vector<8x64xf32>
    %99 = vector.broadcast %8 : vector<1x64xf32> to vector<8x64xf32>
    %100 = arith.addf %98, %99 : vector<8x64xf32>
    %101 = math.tanh %100 : vector<8x64xf32>
    %102 = arith.select %17, %100, %101 : vector<8x64xi1>, vector<8x64xf32>
    %103 = vector.extract_strided_slice %14 {offsets = [56, 0], sizes = [8, 64], strides = [1, 1]} : vector<64x64xf32> to vector<8x64xf32>
    %104 = vector.broadcast %7 : vector<1x64xf32> to vector<8x64xf32>
    %105 = arith.addf %103, %104 : vector<8x64xf32>
    %cst_31 = arith.constant dense<0.000000e+00> : vector<8x64xf32>
    %106 = tpu.matmul %102, %1, %cst_31 {dimension_numbers = #tpu.dot_dimension_numbers<[1], [0], [0], [1], [0, 0, 1, 1], [], []>} : vector<8x64xf32>, vector<64x64xf32>, vector<8x64xf32> -> vector<8x64xf32>
    %107 = arith.addf %105, %106 : vector<8x64xf32>
    %108 = math.tanh %107 : vector<8x64xf32>
    %109 = arith.select %17, %108, %107 : vector<8x64xi1>, vector<8x64xf32>
    %cst_32 = arith.constant dense<0.000000e+00> : vector<8x64xf32>
    %110 = tpu.matmul %109, %2, %cst_32 {dimension_numbers = #tpu.dot_dimension_numbers<[1], [0], [0], [1], [0, 0, 1, 1], [], []>} : vector<8x64xf32>, vector<64x64xf32>, vector<8x64xf32> -> vector<8x64xf32>
    %111 = vector.broadcast %8 : vector<1x64xf32> to vector<8x64xf32>
    %112 = arith.addf %110, %111 : vector<8x64xf32>
    %113 = math.tanh %112 : vector<8x64xf32>
    %114 = arith.select %17, %112, %113 : vector<8x64xi1>, vector<8x64xf32>
    %cst_33 = arith.constant dense<0.000000e+00> : vector<8x64xf32>
    %115 = tpu.matmul %114, %3, %cst_33 {dimension_numbers = #tpu.dot_dimension_numbers<[1], [0], [0], [1], [0, 0, 1, 1], [], []>} : vector<8x64xf32>, vector<64x64xf32>, vector<8x64xf32> -> vector<8x64xf32>
    %116 = vector.broadcast %9 : vector<1x64xf32> to vector<8x64xf32>
    %117 = arith.addf %115, %116 : vector<8x64xf32>
    %cst_34 = arith.constant 0.000000e+00 : f32
    %118 = vector.broadcast %cst_34 : f32 to vector<8x64xf32>
    %119 = arith.maximumf %117, %118 : vector<8x64xf32>
    %cst_35 = arith.constant dense<0.000000e+00> : vector<8x64xf32>
    %120 = tpu.matmul %119, %4, %cst_35 {dimension_numbers = #tpu.dot_dimension_numbers<[1], [0], [0], [1], [0, 0, 1, 1], [], []>} : vector<8x64xf32>, vector<64x64xf32>, vector<8x64xf32> -> vector<8x64xf32>
    %121 = vector.broadcast %10 : vector<1x64xf32> to vector<8x64xf32>
    %122 = arith.addf %120, %121 : vector<8x64xf32>
    %cst_36 = arith.constant dense<0.000000e+00> : vector<8x64xf32>
    %123 = tpu.matmul %122, %5, %cst_36 {dimension_numbers = #tpu.dot_dimension_numbers<[1], [0], [0], [1], [0, 0, 1, 1], [], []>} : vector<8x64xf32>, vector<64x64xf32>, vector<8x64xf32> -> vector<8x64xf32>
    %124 = vector.broadcast %11 : vector<1x64xf32> to vector<8x64xf32>
    %125 = arith.addf %123, %124 : vector<8x64xf32>
    %cst_37 = arith.constant 0.000000e+00 : f32
    %126 = vector.broadcast %cst_37 : f32 to vector<8x64xf32>
    %127 = arith.maximumf %125, %126 : vector<8x64xf32>
    %cst_38 = arith.constant dense<0.000000e+00> : vector<8x64xf32>
    %128 = tpu.matmul %127, %6, %cst_38 {dimension_numbers = #tpu.dot_dimension_numbers<[1], [0], [0], [1], [0, 0, 1, 1], [], []>} : vector<8x64xf32>, vector<64x64xf32>, vector<8x64xf32> -> vector<8x64xf32>
    %129 = vector.broadcast %12 : vector<1x64xf32> to vector<8x64xf32>
    %130 = arith.addf %128, %129 : vector<8x64xf32>
    %cst_39 = arith.constant 0.000000e+00 : f32
    %131 = vector.broadcast %cst_39 : f32 to vector<8x64xf32>
    %132 = arith.maximumf %130, %131 : vector<8x64xf32>
    %133 = vector.extract_strided_slice %132 {offsets = [0, 0], sizes = [2, 1], strides = [1, 1]} : vector<8x64xf32> to vector<2x1xf32>
    %c0_40 = arith.constant 0 : index
    %c0_41 = arith.constant 0 : index
    %134 = vector.load %arg4[%c0_40, %c0_41] : memref<2x1xf32, #tpu.memory_space<vmem>>, vector<2x1xf32>
    tpu.vector_store %arg4[%c0_40, %c0_41], %133 {strides = array<i32>} : memref<2x1xf32, #tpu.memory_space<vmem>>, vector<2x1xf32>,
    return
  }
  func.func @transform_0(%arg0: i32) -> (i32, i32) {
    %c0_i32 = arith.constant 0 : i32
    %c0_i32_0 = arith.constant 0 : i32
    %c0_i32_1 = arith.constant 0 : i32
    return %c0_i32, %c0_i32_0 : i32, i32
  }
  func.func @transform_1(%arg0: i32) -> (i32, i32) {
    %c0_i32 = arith.constant 0 : i32
    %c0_i32_0 = arith.constant 0 : i32
    %c0_i32_1 = arith.constant 0 : i32
    return %c0_i32, %c0_i32_0 : i32, i32
  }
  func.func @transform_2(%arg0: i32) -> (i32, i32) {
    %c0_i32 = arith.constant 0 : i32
    %c0_i32_0 = arith.constant 0 : i32
    %c0_i32_1 = arith.constant 0 : i32
    return %c0_i32, %c0_i32_0 : i32, i32
  }
  func.func @transform_3(%arg0: i32) -> (i32, i32) {
    %c0_i32 = arith.constant 0 : i32
    %c0_i32_0 = arith.constant 0 : i32
    %c0_i32_1 = arith.constant 0 : i32
    return %c0_i32, %c0_i32_0 : i32, i32
  }
}

</mosaic_0001>

<bundles_post_ra>
// kernel: dirnn_forward.1
= control target key start
LH: loop header
LB: loop body
LE: loop exit
PB: predicated region body
PF: predicated region fallthrough
CT: control target
= control target key end

     0   :  { %v2406_v0 = vmov 0.0   ;;  %vm2407_vm0 = vmmov 0   ;;  %vm78_vm1 = vcmask 130048   ;;  %v208_v34 = vlaneseq  ;;  %s3087_s1 = inlined_call_operand.vmem [shape: f32[400,64], index: 1, kind: input, shape index: {}]   ;;  %s3088_s0 = inlined_call_operand.vmem [shape: f32[64,16], index: 0, kind: input, shape index: {}]   ;;  %s3089_s2 = inlined_call_operand.vmem [shape: f32[8,64], index: 2, kind: input, shape index: {}]   ;;  %s3090_s3 = inlined_call_operand.vmem [shape: f32[2,1], index: 3, kind: output, shape index: {}]  }
   0x1   :  { %1992 = vmatprep.subr.mxu1 %v2406_v0  ;;  %v2432_v1 = vld [vmem:[%s3087_s1 + $0x48] sm:$0xff]  ;;  %v2437_v2 = vld [vmem:[%s3087_s1 + $0x40] sm:$0xff]  ;;  %2008 = vmatprep.mubr.msk.f32.mxu1 %vm2407_vm0, %v2406_v0  ;;  %v2452_v5 = vld [vmem:[%s3087_s1 + $0x38] sm:$0xff]  ;;  %vm216_vm3 = vcmask 523264   ;;  %vm1747_vm4 = vcmask 1024  }
   0x2   :  { %1993 = vmatpush3.msra.mxu1 %v2432_v1  ;;  %v15_v3 = vld [vmem:[%s3087_s1 + $0x8] sm:$0xff]  ;;  %v14_v4 = vld [vmem:[%s3087_s1] sm:$0xff]  ;;  %v2462_v7 = vld [vmem:[%s3087_s1 + $0x30] sm:$0xff]  ;;  %v2611_v35 = vand.u32 127, %v208_v34 }
   0x3   :  { %1994 = vmatprep.subr.mxu1 %v2406_v0  ;;  %1976 = vmatprep.subr.mxu0 %v15_v3  ;;  %v70_v6 = vld [vmem:[%s3088_s0] sm:$0xff]  ;;  %v71_v8 = vld [vmem:[%s3088_s0 + $0x8] sm:$0xff]  ;;  %v2489_v11 = vld [vmem:[%s3087_s1 + $0x18] sm:$0xff] }
   0x4   :  { %1995 = vmatpush3.msra.mxu1 %v2437_v2  ;;  %1977 = vmatpush3.msra.mxu0 %v15_v3  ;;  %v2473_v9 = vld [vmem:[%s3087_s1 + $0x28] sm:$0xff]  ;;  %v2481_v10 = vld [vmem:[%s3087_s1 + $0x20] sm:$0xff]  ;;  %v2496_v12 = vld [vmem:[%s3087_s1 + $0x10] sm:$0xff]  ;;  %vm210_vm2 = vcmp.lt.s32.totalorder %v2611_v35, 32 }
   0x5   :  { %1996 = vmatprep.subr.mxu1 %v2406_v0  ;;  %1978 = vmatprep.subr.mxu0 %v14_v4  ;;  %v2524_v13 = vld [vmem:[%s3087_s1 + $0x88] sm:$0xff]  ;;  %v72_v14 = vld [vmem:[%s3088_s0 + $0x10] sm:$0xff]  ;;  %v73_v15 = vld [vmem:[%s3088_s0 + $0x18] sm:$0xff] }
   0x6   :  { %1997 = vmatpush3.msra.mxu1 %v2452_v5  ;;  %1979 = vmatpush3.msra.mxu0 %v14_v4  ;;  %v2539_v16 = vld [vmem:[%s3087_s1 + $0x80] sm:$0xff]  ;;  %v2546_v17 = vld [vmem:[%s3087_s1 + $0x78] sm:$0xff]  ;;  %v75_v19 = vld [vmem:[%s3088_s0 + $0x28] sm:$0xff] }
   0x7   :  { %1998 = vmatprep.subr.mxu1 %v2406_v0  ;;  %1980 = vmatprep.mubr.msk.f32.mxu0 %vm78_vm1, %v70_v6  ;;  %v74_v18 = vld [vmem:[%s3088_s0 + $0x20] sm:$0xff]  ;;  %v2561_v20 = vld [vmem:[%s3087_s1 + $0x70] sm:$0xff]  ;;  %v2568_v21 = vld [vmem:[%s3087_s1 + $0x68] sm:$0xff] }
   0x8   :  { %1999 = vmatpush3.msra.mxu1 %v2462_v7  ;;  %1981 = vmatmul.mubr.msk.f32.vlgmr.msra.gmra.mxu0 %vm78_vm1, %v71_v8  ;;  %v76_v22 = vld [vmem:[%s3088_s0 + $0x30] sm:$0xff]  ;;  %v77_v23 = vld [vmem:[%s3088_s0 + $0x38] sm:$0xff]  ;;  %v2583_v24 = vld [vmem:[%s3087_s1 + $0x60] sm:$0xff] }
   0x9   :  { %2000 = vmatprep.subr.mxu1 %v2406_v0  ;;  %2011 = vmatprep.subr.mxu0 %v2406_v0  ;;  %v2592_v25 = vld [vmem:[%s3087_s1 + $0x58] sm:$0xff]  ;;  %v2599_v26 = vld [vmem:[%s3087_s1 + $0x50] sm:$0xff]  ;;  %v2608_v28 = vld [vmem:[%s3089_s2] ss:$0 sm:$0xff] }
   0xa   :  { %2001 = vmatpush3.msra.mxu1 %v2473_v9  ;;  %2012 = vmatpush3.msra.mxu0 %v2524_v13  ;;  %v2650_v44 = vld [vmem:[%s3089_s2 + $0x1] ss:$0 sm:$0xff]  ;;  %v40_v35 = vld [vmem:[%s3087_s1 + $0xd0] sm:$0xff] }
   0xb   :  { %2002 = vmatprep.subr.mxu1 %v2406_v0  ;;  %1983 = vmatprep.mubr.msk.f32.mxu0 %vm78_vm1, %v72_v14 }
   0xc   :  { %2003 = vmatpush3.msra.mxu1 %v2481_v10  ;;  %2013 = vmatprep.subr.mxu0 %v2406_v0 }
   0xd   :  { %2004 = vmatprep.subr.mxu1 %v2406_v0  ;;  %1984 = vmatmul.mubr.msk.f32.gmra.mxu0 %vm78_vm1, %v73_v15 }
   0xe   :  { %2005 = vmatpush3.msra.mxu1 %v2489_v11  ;;  %2014 = vmatpush3.msra.mxu0 %v2539_v16 }
   0xf   :  { %2006 = vmatprep.subr.mxu1 %v2406_v0  ;;  %2015 = vmatprep.subr.mxu0 %v2406_v0 }
  0x10   :  { %2007 = vmatpush3.msra.mxu1 %v2496_v12  ;;  %2016 = vmatpush3.msra.mxu0 %v2546_v17 }
  0x11   :  { %2009 = vmatmul.mubr.f32.vlgmr.msra.gmra.mxu1 %v2406_v0  ;;  %2030 = vmatprep.subr.mxu1 %v2406_v0 }
  0x12   :  { %2031 = vmatpush3.msra.mxu1 %v2432_v1  ;;  %2046 = vmatprep.mubr.msk.f32.mxu1 %vm2407_vm0, %v2406_v0 }
  0x13   :  { %2032 = vmatprep.subr.mxu1 %v2406_v0  ;;  %1986 = vmatprep.mubr.msk.f32.mxu0 %vm78_vm1, %v74_v18 }
  0x14   :  { %2033 = vmatpush3.msra.mxu1 %v2437_v2  ;;  %2017 = vmatprep.subr.mxu0 %v2406_v0 }
  0x15   :  { %2034 = vmatprep.subr.mxu1 %v2406_v0  ;;  %1987 = vmatmul.mubr.msk.f32.gmra.mxu0 %vm78_vm1, %v75_v19 }
  0x16   :  { %2035 = vmatpush3.msra.mxu1 %v2452_v5  ;;  %2018 = vmatpush3.msra.mxu0 %v2561_v20 }
  0x17   :  { %2036 = vmatprep.subr.mxu1 %v2406_v0  ;;  %2019 = vmatprep.subr.mxu0 %v2406_v0 }
  0x18   :  { %2037 = vmatpush3.msra.mxu1 %v2462_v7  ;;  %2020 = vmatpush3.msra.mxu0 %v2568_v21 }
  0x19   :  { %2038 = vmatprep.subr.mxu1 %v2406_v0  ;;  %1989 = vmatprep.mubr.msk.f32.mxu0 %vm78_vm1, %v76_v22 }
  0x1a   :  { %2039 = vmatpush3.msra.mxu1 %v2473_v9  ;;  %2021 = vmatprep.subr.mxu0 %v2406_v0 }
  0x1b   :  { %2040 = vmatprep.subr.mxu1 %v2406_v0  ;;  %1990 = vmatmul.mubr.msk.f32.gmra.mxu0 %vm78_vm1, %v77_v23 }
  0x1c   :  { %2041 = vmatpush3.msra.mxu1 %v2481_v10  ;;  %2022 = vmatpush3.msra.mxu0 %v2583_v24 }
  0x1d   :  { %2042 = vmatprep.subr.mxu1 %v2406_v0  ;;  %2027 = vmatprep.mubr.msk.f32.mxu0 %vm2407_vm0, %v2406_v0 }
  0x1e   :  { %2043 = vmatpush3.msra.mxu1 %v2489_v11  ;;  %2023 = vmatprep.subr.mxu0 %v2406_v0 }
  0x1f   :  { %2044 = vmatprep.subr.mxu1 %v2406_v0  ;;  %2024 = vmatpush3.msra.mxu0 %v2592_v25 }
  0x20   :  { %2045 = vmatpush3.msra.mxu1 %v2496_v12  ;;  %2025 = vmatprep.subr.mxu0 %v2406_v0 }
  0x21   :  { %2068 = vmatprep.subr.mxu1 %v2406_v0  ;;  %2026 = vmatpush3.msra.mxu0 %v2599_v26 }
  0x22   :  { %2049 = vmatprep.subr.mxu0 %v2406_v0 }
  0xc8   :  { %v2603_v27 = vpop.f32.mrf.mxu0 }
  0xc9   :  { %v372_v50 = vadd.f32 %v2603_v27, %v2608_v28 }
  0xca   :  { %v169_v29 = vpop.f32.mrf.mxu0 }
  0xcb   :  { %v215_v30 = vadd.f32 %v2608_v28, %v169_v29 }
  0xcd   :  { %v2635_v38 = vpop.f32.mrf.mxu0 }
  0xce   :  { %v676_v22 = vadd.f32 %v2635_v38, %v2608_v28 }
  0xcf   :  { %v2637_v39 = vpop.f32.mrf.mxu0 }
  0xd0   :  { %v524_v61 = vadd.f32 %v2608_v28, %v2637_v39 }
  0xd1   :  { %v286_v31 = vpop.f32.mrf.mxu1 }
  0xd2   :  { %v290_v32 = vadd.f32 %v286_v31, %v215_v30 }
  0xd3   :  { %v2010_v33 = vpop.f32.mrf.mxu1 }
  0xd4   :  { %2374 = vtanh.f32 %v290_v32 }
  0xd5   :  { %v2639_v40 = vpop.f32.mrf.mxu0 }
  0xd7   :  { %v2641_v41 = vpop.f32.mrf.mxu0 }
  0xd8   :  { %v828_v38 = vadd.f32 %v2608_v28, %v2641_v41 }
  0xdb   :  { %v2643_v42 = vpop.f32.mrf.mxu0 }
  0xdd   :  { %v2645_v43 = vpop.f32.mrf.mxu0 }
  0xe1   :  { %v2375_v36 = vpop.eup %2374 }
  0xe2   :  { %v292_v37 = vsel %vm210_vm2, %v2375_v36, %v290_v32 }
  0xe3   :  { %2028 = vmatmul.mubr.msk.f32.vlgmr.msra.gmra.mxu0 %vm216_vm3, %v292_v37 }
  0xe4   :  { %2050 = vmatpush3.msra.mxu0 %v2524_v13  ;;  %2065 = vmatprep.mubr.msk.f32.mxu0 %vm2407_vm0, %v2406_v0 }
  0xe5   :  { %2051 = vmatprep.subr.mxu0 %v2406_v0 }
  0xe6   :  { %2052 = vmatpush3.msra.mxu0 %v2539_v16 }
  0xe7   :  { %2053 = vmatprep.subr.mxu0 %v2406_v0 }
  0xe8   :  { %2054 = vmatpush3.msra.mxu0 %v2546_v17 }
  0xe9   :  { %2055 = vmatprep.subr.mxu0 %v2406_v0 }
  0xea   :  { %2056 = vmatpush3.msra.mxu0 %v2561_v20 }
  0xeb   :  { %2057 = vmatprep.subr.mxu0 %v2406_v0 }
  0xec   :  { %2058 = vmatpush3.msra.mxu0 %v2568_v21 }
  0xed   :  { %2059 = vmatprep.subr.mxu0 %v2406_v0 }
  0xee   :  { %2060 = vmatpush3.msra.mxu0 %v2583_v24 }
  0xef   :  { %2061 = vmatprep.subr.mxu0 %v2406_v0 }
  0xf0   :  { %2062 = vmatpush3.msra.mxu0 %v2592_v25 }
  0xf1   :  { %2063 = vmatprep.subr.mxu0 %v2406_v0 }
  0xf2   :  { %2064 = vmatpush3.msra.mxu0 %v2599_v26 }
  0xf3   :  { %2087 = vmatprep.subr.mxu0 %v2406_v0 }
 0x1a3   :  { %v366_v45 = vpop.f32.mrf.mxu0 }
 0x1a4   :  { %v367_v46 = vadd.f32 %v2650_v44, %v366_v45 }
 0x1a5   :  { %v2029_v47 = vpop.f32.mrf.mxu0 }
 0x1a6   :  { %2376 = vtanh.f32 %v367_v46 }
 0x1b3   :  { %v2377_v48 = vpop.eup %2376 }
 0x1b4   :  { %v371_v49 = vsel %vm210_vm2, %v367_v46, %v2377_v48 }
 0x1b5   :  { %2047 = vmatmul.mubr.msk.f32.vlgmr.msra.gmra.mxu1 %vm216_vm3, %v371_v49 }
 0x1b6   :  { %2069 = vmatpush3.msra.mxu1 %v2432_v1  ;;  %2084 = vmatprep.mubr.msk.f32.mxu1 %vm2407_vm0, %v2406_v0 }
 0x1b7   :  { %2070 = vmatprep.subr.mxu1 %v2406_v0 }
 0x1b8   :  { %2071 = vmatpush3.msra.mxu1 %v2437_v2 }
 0x1b9   :  { %2072 = vmatprep.subr.mxu1 %v2406_v0 }
 0x1ba   :  { %2073 = vmatpush3.msra.mxu1 %v2452_v5 }
 0x1bb   :  { %2074 = vmatprep.subr.mxu1 %v2406_v0 }
 0x1bc   :  { %2075 = vmatpush3.msra.mxu1 %v2462_v7 }
 0x1bd   :  { %2076 = vmatprep.subr.mxu1 %v2406_v0 }
 0x1be   :  { %2077 = vmatpush3.msra.mxu1 %v2473_v9 }
 0x1bf   :  { %2078 = vmatprep.subr.mxu1 %v2406_v0 }
 0x1c0   :  { %2079 = vmatpush3.msra.mxu1 %v2481_v10 }
 0x1c1   :  { %2080 = vmatprep.subr.mxu1 %v2406_v0 }
 0x1c2   :  { %2081 = vmatpush3.msra.mxu1 %v2489_v11 }
 0x1c3   :  { %2082 = vmatprep.subr.mxu1 %v2406_v0 }
 0x1c4   :  { %2083 = vmatpush3.msra.mxu1 %v2496_v12 }
 0x1c5   :  { %2106 = vmatprep.subr.mxu1 %v2406_v0 }
 0x275   :  { %v442_v51 = vpop.f32.mrf.mxu1 }
 0x276   :  { %v446_v52 = vadd.f32 %v442_v51, %v372_v50 }
 0x277   :  { %v2048_v53 = vpop.f32.mrf.mxu1 }
 0x278   :  { %2378 = vtanh.f32 %v446_v52  ;;  %v980_v53 = vadd.f32 %v2639_v40, %v2608_v28 }
 0x285   :  { %v2379_v54 = vpop.eup %2378 }
 0x286   :  { %v448_v55 = vsel %vm210_vm2, %v2379_v54, %v446_v52 }
 0x287   :  { %2066 = vmatmul.mubr.msk.f32.vlgmr.msra.gmra.mxu0 %vm216_vm3, %v448_v55 }
 0x288   :  { %2088 = vmatpush3.msra.mxu0 %v2524_v13  ;;  %2103 = vmatprep.mubr.msk.f32.mxu0 %vm2407_vm0, %v2406_v0 }
 0x289   :  { %2089 = vmatprep.subr.mxu0 %v2406_v0 }
 0x28a   :  { %2090 = vmatpush3.msra.mxu0 %v2539_v16 }
 0x28b   :  { %2091 = vmatprep.subr.mxu0 %v2406_v0 }
 0x28c   :  { %2092 = vmatpush3.msra.mxu0 %v2546_v17 }
 0x28d   :  { %2093 = vmatprep.subr.mxu0 %v2406_v0 }
 0x28e   :  { %2094 = vmatpush3.msra.mxu0 %v2561_v20 }
 0x28f   :  { %2095 = vmatprep.subr.mxu0 %v2406_v0 }
 0x290   :  { %2096 = vmatpush3.msra.mxu0 %v2568_v21 }
 0x291   :  { %2097 = vmatprep.subr.mxu0 %v2406_v0 }
 0x292   :  { %2098 = vmatpush3.msra.mxu0 %v2583_v24 }
 0x293   :  { %2099 = vmatprep.subr.mxu0 %v2406_v0 }
 0x294   :  { %2100 = vmatpush3.msra.mxu0 %v2592_v25 }
 0x295   :  { %2101 = vmatprep.subr.mxu0 %v2406_v0 }
 0x296   :  { %2102 = vmatpush3.msra.mxu0 %v2599_v26 }
 0x297   :  { %2125 = vmatprep.subr.mxu0 %v2406_v0 }
 0x347   :  { %v518_v56 = vpop.f32.mrf.mxu0 }
 0x348   :  { %v519_v57 = vadd.f32 %v2650_v44, %v518_v56 }
 0x349   :  { %v2067_v58 = vpop.f32.mrf.mxu0 }
 0x34a   :  { %2380 = vtanh.f32 %v519_v57 }
 0x357   :  { %v2381_v59 = vpop.eup %2380 }
 0x358   :  { %v523_v60 = vsel %vm210_vm2, %v519_v57, %v2381_v59 }
 0x359   :  { %2085 = vmatmul.mubr.msk.f32.vlgmr.msra.gmra.mxu1 %vm216_vm3, %v523_v60 }
 0x35a   :  { %2107 = vmatpush3.msra.mxu1 %v2432_v1  ;;  %2122 = vmatprep.mubr.msk.f32.mxu1 %vm2407_vm0, %v2406_v0 }
 0x35b   :  { %2108 = vmatprep.subr.mxu1 %v2406_v0 }
 0x35c   :  { %2109 = vmatpush3.msra.mxu1 %v2437_v2 }
 0x35d   :  { %2110 = vmatprep.subr.mxu1 %v2406_v0 }
 0x35e   :  { %2111 = vmatpush3.msra.mxu1 %v2452_v5 }
 0x35f   :  { %2112 = vmatprep.subr.mxu1 %v2406_v0 }
 0x360   :  { %2113 = vmatpush3.msra.mxu1 %v2462_v7 }
 0x361   :  { %2114 = vmatprep.subr.mxu1 %v2406_v0 }
 0x362   :  { %2115 = vmatpush3.msra.mxu1 %v2473_v9 }
 0x363   :  { %2116 = vmatprep.subr.mxu1 %v2406_v0 }
 0x364   :  { %2117 = vmatpush3.msra.mxu1 %v2481_v10 }
 0x365   :  { %2118 = vmatprep.subr.mxu1 %v2406_v0 }
 0x366   :  { %2119 = vmatpush3.msra.mxu1 %v2489_v11 }
 0x367   :  { %2120 = vmatprep.subr.mxu1 %v2406_v0 }
 0x368   :  { %2121 = vmatpush3.msra.mxu1 %v2496_v12 }
 0x369   :  { %2144 = vmatprep.subr.mxu1 %v2406_v0 }
 0x419   :  { %v594_v62 = vpop.f32.mrf.mxu1 }
 0x41a   :  { %v598_v63 = vadd.f32 %v594_v62, %v524_v61 }
 0x41b   :  { %v2086_v3 = vpop.f32.mrf.mxu1 }
 0x41c   :  { %2382 = vtanh.f32 %v598_v63  ;;  %v36_v3 = vld [vmem:[%s3087_s1 + $0xb0] sm:$0xff] }
 0x429   :  { %v2383_v4 = vpop.eup %2382 }
 0x42a   :  { %v600_v6 = vsel %vm210_vm2, %v2383_v4, %v598_v63  ;;  %v39_v63 = vld [vmem:[%s3087_s1 + $0xc8] sm:$0xff] }
 0x42b   :  { %2104 = vmatmul.mubr.msk.f32.vlgmr.msra.gmra.mxu0 %vm216_vm3, %v600_v6  ;;  %v35_v4 = vld [vmem:[%s3087_s1 + $0xa8] sm:$0xff]  ;;  %v34_v6 = vld [vmem:[%s3087_s1 + $0xa0] sm:$0xff] }
 0x42c   :  { %2126 = vmatpush3.msra.mxu0 %v2524_v13  ;;  %2141 = vmatprep.mubr.msk.f32.mxu0 %vm2407_vm0, %v2406_v0 }
 0x42d   :  { %2127 = vmatprep.subr.mxu0 %v2406_v0 }
 0x42e   :  { %2128 = vmatpush3.msra.mxu0 %v2539_v16 }
 0x42f   :  { %2129 = vmatprep.subr.mxu0 %v2406_v0 }
 0x430   :  { %2130 = vmatpush3.msra.mxu0 %v2546_v17 }
 0x431   :  { %2131 = vmatprep.subr.mxu0 %v2406_v0 }
 0x432   :  { %2132 = vmatpush3.msra.mxu0 %v2561_v20 }
 0x433   :  { %2133 = vmatprep.subr.mxu0 %v2406_v0 }
 0x434   :  { %2134 = vmatpush3.msra.mxu0 %v2568_v21 }
 0x435   :  { %2135 = vmatprep.subr.mxu0 %v2406_v0 }
 0x436   :  { %2136 = vmatpush3.msra.mxu0 %v2583_v24 }
 0x437   :  { %2137 = vmatprep.subr.mxu0 %v2406_v0 }
 0x438   :  { %2138 = vmatpush3.msra.mxu0 %v2592_v25 }
 0x439   :  { %2139 = vmatprep.subr.mxu0 %v2406_v0 }
 0x43a   :  { %2140 = vmatpush3.msra.mxu0 %v2599_v26 }
 0x43b   :  { %2163 = vmatprep.subr.mxu0 %v2406_v0 }
 0x4eb   :  { %v670_v8 = vpop.f32.mrf.mxu0 }
 0x4ec   :  { %v671_v14 = vadd.f32 %v2650_v44, %v670_v8  ;;  %v33_v8 = vld [vmem:[%s3087_s1 + $0x98] sm:$0xff] }
 0x4ed   :  { %v2105_v15 = vpop.f32.mrf.mxu0 }
 0x4ee   :  { %2384 = vtanh.f32 %v671_v14  ;;  %v47_v15 = vld [vmem:[%s3087_s1 + $0x108] sm:$0xff] }
 0x4fb   :  { %v2385_v18 = vpop.eup %2384 }
 0x4fc   :  { %v675_v19 = vsel %vm210_vm2, %v671_v14, %v2385_v18  ;;  %v32_v14 = vld [vmem:[%s3087_s1 + $0x90] sm:$0xff]  ;;  %v46_v18 = vld [vmem:[%s3087_s1 + $0x100] sm:$0xff] }
 0x4fd   :  { %2123 = vmatmul.mubr.msk.f32.vlgmr.msra.gmra.mxu1 %vm216_vm3, %v675_v19  ;;  %v45_v19 = vld [vmem:[%s3087_s1 + $0xf8] sm:$0xff] }
 0x4fe   :  { %2145 = vmatpush3.msra.mxu1 %v2432_v1  ;;  %2160 = vmatprep.mubr.msk.f32.mxu1 %vm2407_vm0, %v2406_v0 }
 0x4ff   :  { %2146 = vmatprep.subr.mxu1 %v2406_v0 }
 0x500   :  { %2147 = vmatpush3.msra.mxu1 %v2437_v2 }
 0x501   :  { %2148 = vmatprep.subr.mxu1 %v2406_v0 }
 0x502   :  { %2149 = vmatpush3.msra.mxu1 %v2452_v5 }
 0x503   :  { %2150 = vmatprep.subr.mxu1 %v2406_v0 }
 0x504   :  { %2151 = vmatpush3.msra.mxu1 %v2462_v7 }
 0x505   :  { %2152 = vmatprep.subr.mxu1 %v2406_v0 }
 0x506   :  { %2153 = vmatpush3.msra.mxu1 %v2473_v9 }
 0x507   :  { %2154 = vmatprep.subr.mxu1 %v2406_v0 }
 0x508   :  { %2155 = vmatpush3.msra.mxu1 %v2481_v10 }
 0x509   :  { %2156 = vmatprep.subr.mxu1 %v2406_v0 }
 0x50a   :  { %2157 = vmatpush3.msra.mxu1 %v2489_v11 }
 0x50b   :  { %2158 = vmatprep.subr.mxu1 %v2406_v0 }
 0x50c   :  { %2159 = vmatpush3.msra.mxu1 %v2496_v12 }
 0x50d   :  { %2182 = vmatprep.subr.mxu1 %v2406_v0 }
 0x5bd   :  { %v746_v23 = vpop.f32.mrf.mxu1 }
 0x5be   :  { %v750_v27 = vadd.f32 %v746_v23, %v676_v22  ;;  %v44_v22 = vld [vmem:[%s3087_s1 + $0xf0] sm:$0xff]  ;;  %v43_v23 = vld [vmem:[%s3087_s1 + $0xe8] sm:$0xff] }
 0x5bf   :  { %v2124_v29 = vpop.f32.mrf.mxu1 }
 0x5c0   :  { %2386 = vtanh.f32 %v750_v27 }
 0x5cd   :  { %v2387_v30 = vpop.eup %2386 }
 0x5ce   :  { %v752_v31 = vsel %vm210_vm2, %v2387_v30, %v750_v27 }
 0x5cf   :  { %2142 = vmatmul.mubr.msk.f32.vlgmr.msra.gmra.mxu0 %vm216_vm3, %v752_v31 }
 0x5d0   :  { %2164 = vmatpush3.msra.mxu0 %v2524_v13  ;;  %2179 = vmatprep.mubr.msk.f32.mxu0 %vm2407_vm0, %v2406_v0 }
 0x5d1   :  { %2165 = vmatprep.subr.mxu0 %v2406_v0 }
 0x5d2   :  { %2166 = vmatpush3.msra.mxu0 %v2539_v16 }
 0x5d3   :  { %2167 = vmatprep.subr.mxu0 %v2406_v0 }
 0x5d4   :  { %2168 = vmatpush3.msra.mxu0 %v2546_v17 }
 0x5d5   :  { %2169 = vmatprep.subr.mxu0 %v2406_v0 }
 0x5d6   :  { %2170 = vmatpush3.msra.mxu0 %v2561_v20 }
 0x5d7   :  { %2171 = vmatprep.subr.mxu0 %v2406_v0 }
 0x5d8   :  { %2172 = vmatpush3.msra.mxu0 %v2568_v21 }
 0x5d9   :  { %2173 = vmatprep.subr.mxu0 %v2406_v0 }
 0x5da   :  { %2174 = vmatpush3.msra.mxu0 %v2583_v24 }
 0x5db   :  { %2175 = vmatprep.subr.mxu0 %v2406_v0 }
 0x5dc   :  { %2176 = vmatpush3.msra.mxu0 %v2592_v25 }
 0x5dd   :  { %2177 = vmatprep.subr.mxu0 %v2406_v0 }
 0x5de   :  { %2178 = vmatpush3.msra.mxu0 %v2599_v26 }
 0x5df   :  { %2201 = vmatprep.subr.mxu0 %v2406_v0 }
 0x68f   :  { %v822_v32 = vpop.f32.mrf.mxu0 }
 0x690   :  { %v823_v33 = vadd.f32 %v2650_v44, %v822_v32 }
 0x691   :  { %v2143_v34 = vpop.f32.mrf.mxu0 }
 0x692   :  { %2388 = vtanh.f32 %v823_v33  ;;  %v55_v34 = vld [vmem:[%s3087_s1 + $0x148] sm:$0xff] }
 0x69f   :  { %v2389_v36 = vpop.eup %2388 }
 0x6a0   :  { %v827_v37 = vsel %vm210_vm2, %v823_v33, %v2389_v36  ;;  %v42_v33 = vld [vmem:[%s3087_s1 + $0xe0] sm:$0xff] }
 0x6a1   :  { %2161 = vmatmul.mubr.msk.f32.vlgmr.msra.gmra.mxu1 %vm216_vm3, %v827_v37  ;;  %v54_v36 = vld [vmem:[%s3087_s1 + $0x140] sm:$0xff]  ;;  %v53_v37 = vld [vmem:[%s3087_s1 + $0x138] sm:$0xff] }
 0x6a2   :  { %2183 = vmatpush3.msra.mxu1 %v2432_v1  ;;  %2198 = vmatprep.mubr.msk.f32.mxu1 %vm2407_vm0, %v2406_v0 }
 0x6a3   :  { %2184 = vmatprep.subr.mxu1 %v2406_v0 }
 0x6a4   :  { %2185 = vmatpush3.msra.mxu1 %v2437_v2 }
 0x6a5   :  { %2186 = vmatprep.subr.mxu1 %v2406_v0 }
 0x6a6   :  { %2187 = vmatpush3.msra.mxu1 %v2452_v5 }
 0x6a7   :  { %2188 = vmatprep.subr.mxu1 %v2406_v0 }
 0x6a8   :  { %2189 = vmatpush3.msra.mxu1 %v2462_v7 }
 0x6a9   :  { %2190 = vmatprep.subr.mxu1 %v2406_v0 }
 0x6aa   :  { %2191 = vmatpush3.msra.mxu1 %v2473_v9 }
 0x6ab   :  { %2192 = vmatprep.subr.mxu1 %v2406_v0 }
 0x6ac   :  { %2193 = vmatpush3.msra.mxu1 %v2481_v10 }
 0x6ad   :  { %2194 = vmatprep.subr.mxu1 %v2406_v0 }
 0x6ae   :  { %2195 = vmatpush3.msra.mxu1 %v2489_v11 }
 0x6af   :  { %2196 = vmatprep.subr.mxu1 %v2406_v0 }
 0x6b0   :  { %2197 = vmatpush3.msra.mxu1 %v2496_v12 }
 0x6b1   :  { %2220 = vmatprep.subr.mxu1 %v2406_v0 }
 0x761   :  { %v898_v39 = vpop.f32.mrf.mxu1 }
 0x762   :  { %v902_v45 = vadd.f32 %v898_v39, %v828_v38  ;;  %v52_v38 = vld [vmem:[%s3087_s1 + $0x130] sm:$0xff]  ;;  %v51_v39 = vld [vmem:[%s3087_s1 + $0x128] sm:$0xff] }
 0x763   :  { %v2162_v46 = vpop.f32.mrf.mxu1 }
 0x764   :  { %2390 = vtanh.f32 %v902_v45  ;;  %v1778_v46 = vld [vmem:[%s3089_s2 + $0x2] ss:$0 sm:$0xff] }
 0x771   :  { %v2391_v47 = vpop.eup %2390 }
 0x772   :  { %v904_v48 = vsel %vm210_vm2, %v2391_v47, %v902_v45  ;;  %v50_v45 = vld [vmem:[%s3087_s1 + $0x120] sm:$0xff] }
 0x773   :  { %2180 = vmatmul.mubr.msk.f32.vlgmr.msra.gmra.mxu0 %vm216_vm3, %v904_v48 }
 0x774   :  { %2202 = vmatpush3.msra.mxu0 %v2524_v13  ;;  %2217 = vmatprep.mubr.msk.f32.mxu0 %vm2407_vm0, %v2406_v0 }
 0x775   :  { %2203 = vmatprep.subr.mxu0 %v2406_v0 }
 0x776   :  { %2204 = vmatpush3.msra.mxu0 %v2539_v16 }
 0x777   :  { %2205 = vmatprep.subr.mxu0 %v2406_v0 }
 0x778   :  { %2206 = vmatpush3.msra.mxu0 %v2546_v17 }
 0x779   :  { %2207 = vmatprep.subr.mxu0 %v2406_v0 }
 0x77a   :  { %2208 = vmatpush3.msra.mxu0 %v2561_v20 }
 0x77b   :  { %2209 = vmatprep.subr.mxu0 %v2406_v0 }
 0x77c   :  { %2210 = vmatpush3.msra.mxu0 %v2568_v21 }
 0x77d   :  { %2211 = vmatprep.subr.mxu0 %v2406_v0 }
 0x77e   :  { %2212 = vmatpush3.msra.mxu0 %v2583_v24 }
 0x77f   :  { %2213 = vmatprep.subr.mxu0 %v2406_v0 }
 0x780   :  { %2214 = vmatpush3.msra.mxu0 %v2592_v25 }
 0x781   :  { %2215 = vmatprep.subr.mxu0 %v2406_v0 }
 0x782   :  { %2216 = vmatpush3.msra.mxu0 %v2599_v26 }
 0x783   :  { %2239 = vmatprep.subr.mxu0 %v2406_v0 }
 0x833   :  { %v974_v41 = vpop.f32.mrf.mxu0 }
 0x834   :  { %v975_v49 = vadd.f32 %v2650_v44, %v974_v41 }
 0x835   :  { %v2181_v50 = vpop.f32.mrf.mxu0 }
 0x836   :  { %2392 = vtanh.f32 %v975_v49  ;;  %v49_v50 = vld [vmem:[%s3087_s1 + $0x118] sm:$0xff] }
 0x843   :  { %v2393_v51 = vpop.eup %2392 }
 0x844   :  { %v979_v52 = vsel %vm210_vm2, %v975_v49, %v2393_v51  ;;  %v48_v51 = vld [vmem:[%s3087_s1 + $0x110] sm:$0xff] }
 0x845   :  { %2199 = vmatmul.mubr.msk.f32.vlgmr.msra.gmra.mxu1 %vm216_vm3, %v979_v52  ;;  %v63_v52 = vld [vmem:[%s3087_s1 + $0x188] sm:$0xff] }
 0x846   :  { %2221 = vmatpush3.msra.mxu1 %v2432_v1  ;;  %2236 = vmatprep.mubr.msk.f32.mxu1 %vm2407_vm0, %v2406_v0 }
 0x847   :  { %2222 = vmatprep.subr.mxu1 %v2406_v0 }
 0x848   :  { %2223 = vmatpush3.msra.mxu1 %v2437_v2 }
 0x849   :  { %2224 = vmatprep.subr.mxu1 %v2406_v0 }
 0x84a   :  { %2225 = vmatpush3.msra.mxu1 %v2452_v5 }
 0x84b   :  { %2226 = vmatprep.subr.mxu1 %v2406_v0 }
 0x84c   :  { %2227 = vmatpush3.msra.mxu1 %v2462_v7 }
 0x84d   :  { %2228 = vmatprep.subr.mxu1 %v2406_v0 }
 0x84e   :  { %2229 = vmatpush3.msra.mxu1 %v2473_v9 }
 0x84f   :  { %2230 = vmatprep.subr.mxu1 %v2406_v0 }
 0x850   :  { %2231 = vmatpush3.msra.mxu1 %v2481_v10 }
 0x851   :  { %2232 = vmatprep.subr.mxu1 %v2406_v0 }
 0x852   :  { %2233 = vmatpush3.msra.mxu1 %v2489_v11 }
 0x853   :  { %2234 = vmatprep.subr.mxu1 %v2406_v0 }
 0x854   :  { %2235 = vmatpush3.msra.mxu1 %v2496_v12 }
 0x855   :  { %2258 = vmatprep.subr.mxu1 %v2406_v0 }
 0x905   :  { %v1050_v54 = vpop.f32.mrf.mxu1 }
 0x906   :  { %v1054_v55 = vadd.f32 %v1050_v54, %v980_v53  ;;  %v62_v53 = vld [vmem:[%s3087_s1 + $0x180] sm:$0xff]  ;;  %v61_v54 = vld [vmem:[%s3087_s1 + $0x178] sm:$0xff] }
 0x907   :  { %v2200_v56 = vpop.f32.mrf.mxu1 }
 0x908   :  { %2394 = vtanh.f32 %v1054_v55  ;;  %v59_v56 = vld [vmem:[%s3087_s1 + $0x168] sm:$0xff] }
 0x915   :  { %v2395_v57 = vpop.eup %2394 }
 0x916   :  { %v1056_v58 = vsel %vm210_vm2, %v2395_v57, %v1054_v55  ;;  %v60_v55 = vld [vmem:[%s3087_s1 + $0x170] sm:$0xff]  ;;  %v1780_v57 = vld [vmem:[%s3089_s2 + $0x3] ss:$0 sm:$0xff] }
 0x917   :  { %2218 = vmatmul.mubr.msk.f32.vlgmr.msra.gmra.mxu0 %vm216_vm3, %v1056_v58 }
 0x918   :  { %2240 = vmatpush3.msra.mxu0 %v2524_v13  ;;  %2255 = vmatprep.mubr.msk.f32.mxu0 %vm2407_vm0, %v2406_v0 }
 0x919   :  { %2241 = vmatprep.subr.mxu0 %v2406_v0 }
 0x91a   :  { %2242 = vmatpush3.msra.mxu0 %v2539_v16 }
 0x91b   :  { %2243 = vmatprep.subr.mxu0 %v2406_v0 }
 0x91c   :  { %2244 = vmatpush3.msra.mxu0 %v2546_v17 }
 0x91d   :  { %2245 = vmatprep.subr.mxu0 %v2406_v0 }
 0x91e   :  { %2246 = vmatpush3.msra.mxu0 %v2561_v20 }
 0x91f   :  { %2247 = vmatprep.subr.mxu0 %v2406_v0 }
 0x920   :  { %2248 = vmatpush3.msra.mxu0 %v2568_v21 }
 0x921   :  { %2249 = vmatprep.subr.mxu0 %v2406_v0 }
 0x922   :  { %2250 = vmatpush3.msra.mxu0 %v2583_v24 }
 0x923   :  { %2251 = vmatprep.subr.mxu0 %v2406_v0 }
 0x924   :  { %2252 = vmatpush3.msra.mxu0 %v2592_v25 }
 0x925   :  { %2253 = vmatprep.subr.mxu0 %v2406_v0 }
 0x926   :  { %2254 = vmatpush3.msra.mxu0 %v2599_v26 }
 0x927   :  { %2277 = vmatprep.subr.mxu0 %v2406_v0 }
 0x9d7   :  { %v1126_v40 = vpop.f32.mrf.mxu0 }
 0x9d8   :  { %v1127_v59 = vadd.f32 %v2650_v44, %v1126_v40 }
 0x9d9   :  { %v2219_v60 = vpop.f32.mrf.mxu0 }
 0x9da   :  { %2396 = vtanh.f32 %v1127_v59  ;;  %v58_v60 = vld [vmem:[%s3087_s1 + $0x160] sm:$0xff] }
 0x9e7   :  { %v2397_v61 = vpop.eup %2396 }
 0x9e8   :  { %v1131_v62 = vsel %vm210_vm2, %v1127_v59, %v2397_v61  ;;  %v57_v61 = vld [vmem:[%s3087_s1 + $0x158] sm:$0xff] }
 0x9e9   :  { %2237 = vmatmul.mubr.msk.f32.vlgmr.msra.gmra.mxu1 %vm216_vm3, %v1131_v62  ;;  %v56_v62 = vld [vmem:[%s3087_s1 + $0x150] sm:$0xff] }
 0x9ea   :  { %2259 = vmatpush3.msra.mxu1 %v2432_v1  ;;  %2274 = vmatprep.mubr.msk.f32.mxu1 %vm2407_vm0, %v2406_v0  ;;  %v1132_v1 = vadd.f32 %v2608_v28, %v2645_v43 }
 0x9eb   :  { %2260 = vmatprep.subr.mxu1 %v2406_v0 }
 0x9ec   :  { %2261 = vmatpush3.msra.mxu1 %v2437_v2 }
 0x9ed   :  { %2262 = vmatprep.subr.mxu1 %v2406_v0 }
 0x9ee   :  { %2263 = vmatpush3.msra.mxu1 %v2452_v5 }
 0x9ef   :  { %2264 = vmatprep.subr.mxu1 %v2406_v0 }
 0x9f0   :  { %2265 = vmatpush3.msra.mxu1 %v2462_v7 }
 0x9f1   :  { %2266 = vmatprep.subr.mxu1 %v2406_v0 }
 0x9f2   :  { %2267 = vmatpush3.msra.mxu1 %v2473_v9 }
 0x9f3   :  { %2268 = vmatprep.subr.mxu1 %v2406_v0 }
 0x9f4   :  { %2269 = vmatpush3.msra.mxu1 %v2481_v10 }
 0x9f5   :  { %2270 = vmatprep.subr.mxu1 %v2406_v0 }
 0x9f6   :  { %2271 = vmatpush3.msra.mxu1 %v2489_v11 }
 0x9f7   :  { %2272 = vmatprep.subr.mxu1 %v2406_v0 }
 0x9f8   :  { %2273 = vmatpush3.msra.mxu1 %v2496_v12 }
 0x9f9   :  { %2296 = vmatprep.subr.mxu1 %v2406_v0 }
 0xaa9   :  { %v1202_v2 = vpop.f32.mrf.mxu1 }
 0xaaa   :  { %v1206_v5 = vadd.f32 %v1202_v2, %v1132_v1  ;;  %v1782_v1 = vld [vmem:[%s3089_s2 + $0x4] ss:$0 sm:$0xff] }
 0xaab   :  { %v2238_v7 = vpop.f32.mrf.mxu1 }
 0xaac   :  { %2398 = vtanh.f32 %v1206_v5 }
 0xab9   :  { %v2399_v9 = vpop.eup %2398 }
 0xaba   :  { %v1208_v10 = vsel %vm210_vm2, %v2399_v9, %v1206_v5 }
 0xabb   :  { %2256 = vmatmul.mubr.msk.f32.vlgmr.msra.gmra.mxu0 %vm216_vm3, %v1208_v10  ;;  %v1784_v10 = vld [vmem:[%s3089_s2 + $0x5] ss:$0 sm:$0xff] }
 0xabc   :  { %2278 = vmatpush3.msra.mxu0 %v2524_v13  ;;  %2293 = vmatprep.mubr.msk.f32.mxu0 %vm2407_vm0, %v2406_v0 }
 0xabd   :  { %2279 = vmatprep.subr.mxu0 %v2406_v0 }
 0xabe   :  { %2280 = vmatpush3.msra.mxu0 %v2539_v16 }
 0xabf   :  { %2281 = vmatprep.subr.mxu0 %v2406_v0 }
 0xac0   :  { %2282 = vmatpush3.msra.mxu0 %v2546_v17 }
 0xac1   :  { %2283 = vmatprep.subr.mxu0 %v2406_v0 }
 0xac2   :  { %2284 = vmatpush3.msra.mxu0 %v2561_v20  ;;  %v1284_v20 = vadd.f32 %v2643_v42, %v2608_v28  ;;  %v38_v28 = vld [vmem:[%s3087_s1 + $0xc0] sm:$0xff]  ;;  %v37_v42 = vld [vmem:[%s3087_s1 + $0xb8] sm:$0xff] }
 0xac3   :  { %2285 = vmatprep.subr.mxu0 %v2406_v0 }
 0xac4   :  { %2286 = vmatpush3.msra.mxu0 %v2568_v21 }
 0xac5   :  { %2287 = vmatprep.subr.mxu0 %v2406_v0 }
 0xac6   :  { %2288 = vmatpush3.msra.mxu0 %v2583_v24 }
 0xac7   :  { %2289 = vmatprep.subr.mxu0 %v2406_v0 }
 0xac8   :  { %2290 = vmatpush3.msra.mxu0 %v2592_v25 }
 0xac9   :  { %2291 = vmatprep.subr.mxu0 %v2406_v0 }
 0xaca   :  { %2292 = vmatpush3.msra.mxu0 %v2599_v26 }
 0xacb   :  { %2315 = vmatprep.subr.mxu0 %v2406_v0 }
 0xb7b   :  { %v1278_v11 = vpop.f32.mrf.mxu0 }
 0xb7c   :  { %v1279_v12 = vadd.f32 %v2650_v44, %v1278_v11 }
 0xb7d   :  { %v2257_v13 = vpop.f32.mrf.mxu0 }
 0xb7e   :  { %2400 = vtanh.f32 %v1279_v12 }
 0xb8b   :  { %v2401_v16 = vpop.eup %2400 }
 0xb8c   :  { %v1283_v17 = vsel %vm210_vm2, %v1279_v12, %v2401_v16 }
 0xb8d   :  { %2275 = vmatmul.mubr.msk.f32.vlgmr.msra.gmra.mxu1 %vm216_vm3, %v1283_v17 }
 0xb8e   :  { %2312 = vmatprep.mubr.msk.f32.mxu1 %vm2407_vm0, %v2406_v0  ;;  %2297 = vmatpush3.msra.mxu1 %v39_v63 }
 0xb8f   :  { %2298 = vmatprep.subr.mxu1 %v2406_v0 }
 0xb90   :  { %2299 = vmatpush3.msra.mxu1 %v38_v28 }
 0xb91   :  { %2300 = vmatprep.subr.mxu1 %v2406_v0 }
 0xb92   :  { %2301 = vmatpush3.msra.mxu1 %v37_v42 }
 0xb93   :  { %2302 = vmatprep.subr.mxu1 %v2406_v0 }
 0xb94   :  { %2303 = vmatpush3.msra.mxu1 %v36_v3 }
 0xb95   :  { %2304 = vmatprep.subr.mxu1 %v2406_v0 }
 0xb96   :  { %2305 = vmatpush3.msra.mxu1 %v35_v4 }
 0xb97   :  { %2306 = vmatprep.subr.mxu1 %v2406_v0 }
 0xb98   :  { %2307 = vmatpush3.msra.mxu1 %v34_v6 }
 0xb99   :  { %2308 = vmatprep.subr.mxu1 %v2406_v0 }
 0xb9a   :  { %2309 = vmatpush3.msra.mxu1 %v33_v8 }
 0xb9b   :  { %2310 = vmatprep.subr.mxu1 %v2406_v0 }
 0xb9c   :  { %2311 = vmatpush3.msra.mxu1 %v32_v14 }
 0xb9d   :  { %2334 = vmatprep.subr.mxu1 %v2406_v0 }
 0xc4d   :  { %v1354_v21 = vpop.f32.mrf.mxu1 }
 0xc4e   :  { %v1358_v24 = vadd.f32 %v1354_v21, %v1284_v20 }
 0xc4f   :  { %v2276_v25 = vpop.f32.mrf.mxu1 }
 0xc50   :  { %2402 = vtanh.f32 %v1358_v24 }
 0xc5d   :  { %v2403_v26 = vpop.eup %2402 }
 0xc5e   :  { %v1360_v43 = vsel %vm210_vm2, %v2403_v26, %v1358_v24 }
 0xc5f   :  { %2294 = vmatmul.mubr.msk.f32.vlgmr.msra.gmra.mxu0 %vm216_vm3, %v1360_v43 }
 0xc60   :  { %2331 = vmatprep.mubr.msk.f32.mxu0 %vm2407_vm0, %v2406_v0  ;;  %2316 = vmatpush3.msra.mxu0 %v47_v15 }
 0xc61   :  { %2317 = vmatprep.subr.mxu0 %v2406_v0 }
 0xc62   :  { %2318 = vmatpush3.msra.mxu0 %v46_v18 }
 0xc63   :  { %2319 = vmatprep.subr.mxu0 %v2406_v0 }
 0xc64   :  { %2320 = vmatpush3.msra.mxu0 %v45_v19 }
 0xc65   :  { %2321 = vmatprep.subr.mxu0 %v2406_v0 }
 0xc66   :  { %2322 = vmatpush3.msra.mxu0 %v44_v22 }
 0xc67   :  { %2323 = vmatprep.subr.mxu0 %v2406_v0 }
 0xc68   :  { %2324 = vmatpush3.msra.mxu0 %v43_v23 }
 0xc69   :  { %2325 = vmatprep.subr.mxu0 %v2406_v0 }
 0xc6a   :  { %2326 = vmatpush3.msra.mxu0 %v42_v33 }
 0xc6b   :  { %2327 = vmatprep.subr.mxu0 %v2406_v0 }
 0xd1f   :  { %v1430_v27 = vpop.f32.mrf.mxu0 }
 0xd20   :  { %v1431_v29 = vadd.f32 %v2650_v44, %v1430_v27  ;;  %v41_v44 = vld [vmem:[%s3087_s1 + $0xd8] sm:$0xff] }
 0xd21   :  { %v2295_v30 = vpop.f32.mrf.mxu0  ;;  %2328 = vmatpush3.msra.mxu0 %v41_v44 }
 0xd22   :  { %2404 = vtanh.f32 %v1431_v29  ;;  %2329 = vmatprep.subr.mxu0 %v2406_v0 }
 0xd23   :  { %2330 = vmatpush3.msra.mxu0 %v40_v35 }
 0xd24   :  { %2353 = vmatprep.subr.mxu0 %v2406_v0 }
 0xd2f   :  { %v2405_v31 = vpop.eup %2404 }
 0xd30   :  { %v1435_v32 = vsel %vm210_vm2, %v1431_v29, %v2405_v31 }
 0xd31   :  { %2313 = vmatmul.mubr.msk.f32.vlgmr.msra.gmra.mxu1 %vm216_vm3, %v1435_v32 }
 0xd32   :  { %2350 = vmatprep.mubr.msk.f32.mxu1 %vm2407_vm0, %v2406_v0  ;;  %2335 = vmatpush3.msra.mxu1 %v55_v34 }
 0xd33   :  { %2336 = vmatprep.subr.mxu1 %v2406_v0 }
 0xd34   :  { %2337 = vmatpush3.msra.mxu1 %v54_v36 }
 0xd35   :  { %2338 = vmatprep.subr.mxu1 %v2406_v0 }
 0xd36   :  { %2339 = vmatpush3.msra.mxu1 %v53_v37 }
 0xd37   :  { %2340 = vmatprep.subr.mxu1 %v2406_v0 }
 0xd38   :  { %2341 = vmatpush3.msra.mxu1 %v52_v38 }
 0xd39   :  { %2342 = vmatprep.subr.mxu1 %v2406_v0 }
 0xd3a   :  { %2343 = vmatpush3.msra.mxu1 %v51_v39 }
 0xd3b   :  { %2344 = vmatprep.subr.mxu1 %v2406_v0 }
 0xd3c   :  { %2345 = vmatpush3.msra.mxu1 %v50_v45 }
 0xd3d   :  { %2346 = vmatprep.subr.mxu1 %v2406_v0 }
 0xd3e   :  { %2347 = vmatpush3.msra.mxu1 %v49_v50 }
 0xd3f   :  { %2348 = vmatprep.subr.mxu1 %v2406_v0 }
 0xd40   :  { %2349 = vmatpush3.msra.mxu1 %v48_v51 }
 0xdf1   :  { %v1509_v47 = vpop.f32.mrf.mxu1 }
 0xdf2   :  { %v1510_v48 = vadd.f32 %v1778_v46, %v1509_v47 }
 0xdf3   :  { %v2314_v41 = vpop.f32.mrf.mxu1 }
 0xdf4   :  { %v1513_v49 = vmax.f32 %v1510_v48, 0.0 }
 0xdf6   :  { %2332 = vmatmul.mubr.msk.f32.vlgmr.msra.gmra.mxu0 %vm216_vm3, %v1513_v49 }
 0xdf7   :  { %2369 = vmatprep.mubr.msk.f32.mxu0 %vm2407_vm0, %v2406_v0  ;;  %2354 = vmatpush3.msra.mxu0 %v63_v52 }
 0xdf8   :  { %2355 = vmatprep.subr.mxu0 %v2406_v0 }
 0xdf9   :  { %2356 = vmatpush3.msra.mxu0 %v62_v53 }
 0xdfa   :  { %2357 = vmatprep.subr.mxu0 %v2406_v0 }
 0xdfb   :  { %2358 = vmatpush3.msra.mxu0 %v61_v54 }
 0xdfc   :  { %2359 = vmatprep.subr.mxu0 %v2406_v0 }
 0xdfd   :  { %2360 = vmatpush3.msra.mxu0 %v60_v55 }
 0xdfe   :  { %2361 = vmatprep.subr.mxu0 %v2406_v0 }
 0xdff   :  { %2362 = vmatpush3.msra.mxu0 %v59_v56 }
 0xe00   :  { %2363 = vmatprep.subr.mxu0 %v2406_v0 }
 0xe01   :  { %2364 = vmatpush3.msra.mxu0 %v58_v60 }
 0xe02   :  { %2365 = vmatprep.subr.mxu0 %v2406_v0 }
 0xe03   :  { %2366 = vmatpush3.msra.mxu0 %v57_v61 }
 0xe04   :  { %2367 = vmatprep.subr.mxu0 %v2406_v0 }
 0xe05   :  { %2368 = vmatpush3.msra.mxu0 %v56_v62 }
 0xeb6   :  { %v1587_v58 = vpop.f32.mrf.mxu0 }
 0xeb7   :  { %v1588_v40 = vadd.f32 %v1780_v57, %v1587_v58 }
 0xeb8   :  { %v2333_v59 = vpop.f32.mrf.mxu0 }
 0xeb9   :  { %2351 = vmatmul.mubr.msk.f32.vlgmr.msra.gmra.mxu1 %vm216_vm3, %v1588_v40 }
 0xf79   :  { %v1664_v2 = vpop.f32.mrf.mxu1 }
 0xf7a   :  { %v1665_v5 = vadd.f32 %v1782_v1, %v1664_v2 }
 0xf7b   :  { %v2352_v7 = vpop.f32.mrf.mxu1 }
 0xf7c   :  { %v1668_v9 = vmax.f32 %v1665_v5, 0.0 }
 0xf7e   :  { %2370 = vmatmul.mubr.msk.f32.vlgmr.msra.gmra.mxu0 %vm216_vm3, %v1668_v9 }
0x103e   :  { %v1742_v0 = vpop.f32.mrf.mxu0 }
0x103f   :  { %v1743_v11 = vadd.f32 %v1784_v10, %v1742_v0 }
0x1040   :  { %v2371_v12 = vpop.f32.mrf.mxu0 }
0x1041   :  { %v1746_v13 = vmax.f32 %v1743_v11, 0.0 }
0x1043   :  { %1748 = vst.msk [vmem:[%s3090_s3] sm:$0x3] %vm1747_vm4, %v1746_v13 }

</bundles_post_ra>
